<compile_context>
chip_gen: v5e
topology: v5e:2x2
jax: 0.10.0
libtpu: 0.0.40
codegen_flags: <defaults>
</compile_context>

<pallas_src>
import jax
import jax.numpy as jnp
from jax.experimental import pallas as pl
from jax.experimental.pallas import tpu as pltpu


def _round_up(x: int, m: int) -> int:
    return ((x + m - 1) // m) * m


def _linear_softmax_kernel(x_ref, w_ref, b_ref, o_ref):
    # x_ref: (tb, D) f32 streamed batch tile
    # w_ref: (D, O_PAD) f32, VMEM-resident (padded cols are zero)
    # b_ref: (1, O_PAD) f32, VMEM-resident (padded lanes are -1e30)
    # o_ref: (tb, O)   f32 unpadded output block (O == 10)
    logits = jnp.dot(x_ref[...], w_ref[...],
                     preferred_element_type=jnp.float32) + b_ref[...]

    # Numerically-stable softmax along the lane axis. Padded lanes hold -1e30
    # (from the padded bias), so they never win the max and exp() -> 0, leaving
    # the denominator identical to a softmax over the real 10 logits.
    m = jnp.max(logits, axis=1, keepdims=True)
    e = jnp.exp(logits - m)
    s = jnp.sum(e, axis=1, keepdims=True)

    # EUP approximate reciprocal (own VLIW slot) + one Newton-Raphson step on
    # the VPU: effectively full f32 precision with no vector divide.
    r = pl.reciprocal(s, approx=True)
    r = r * (2.0 - s * r)

    probs = e * r
    # Store only the real output columns -> (tb, O) HBM write, no padding bytes.
    o_ref[...] = probs[:, : o_ref.shape[-1]].astype(o_ref.dtype)


def prepare_params(w_t, b):
    """Pad parameters once per parameter set (not per call).

    w_t: (D, O) f32, b: (O,) f32  ->  w_pad: (D, 128) f32, b_pad: (1, 128) f32.
    Padded weight columns are zero; padded bias lanes are -1e30 so they vanish
    in the in-kernel softmax.
    """
    D, O = w_t.shape
    o_pad = _round_up(max(O, 128), 128)
    w_pad = jnp.zeros((D, o_pad), jnp.float32).at[:, :O].set(
        w_t.astype(jnp.float32))
    b_pad = jnp.full((1, o_pad), -1e30, jnp.float32).at[0, :O].set(
        b.astype(jnp.float32))
    return w_pad, b_pad


def really_simple_forward(x, w_pad, b_pad, out_dim, *, tile_b=4096):
    """x: (B, D) f32 -> (B, out_dim) softmax probabilities (f32)."""
    B, D = x.shape
    o_pad = w_pad.shape[1]

    # Batch tile: multiple of 8 (sublane), at most tile_b, and capped at
    # ~B/2 so the grid has >= 2 steps whenever B allows (v7x megacore).
    tb = min(tile_b, max(8, _round_up(pl.cdiv(B, 2), 8)))
    grid = (pl.cdiv(B, tb),)   # ragged last block handled by Pallas

    return pl.pallas_call(
        _linear_softmax_kernel,
        out_shape=jax.ShapeDtypeStruct((B, out_dim), jnp.float32),
        grid=grid,
        in_specs=[
            pl.BlockSpec((tb, D), lambda i: (i, 0)),       # streamed batch tile
            pl.BlockSpec((D, o_pad), lambda i: (0, 0)),    # VMEM-resident weight
            pl.BlockSpec((1, o_pad), lambda i: (0, 0)),    # VMEM-resident bias
        ],
        out_specs=pl.BlockSpec((tb, out_dim), lambda i: (i, 0)),  # unpadded
        compiler_params=pltpu.CompilerParams(
            dimension_semantics=("parallel",)),            # megacore on v7x
    )(x, w_pad, b_pad)


def make_forward(w_t, b, *, tile_b=4096):
    """Builds a jitted forward with parameter padding hoisted out of the call."""
    w_pad, b_pad = prepare_params(w_t, b)
    out_dim = w_t.shape[1]

    def fwd(x):
        return really_simple_forward(x, w_pad, b_pad, out_dim, tile_b=tile_b)

    return jax.jit(fwd)


def reference_forward(x, w_t, b):
    logits = x @ w_t + b[None, :]
    return jax.nn.softmax(logits, axis=1)


if __name__ == "__main__":
    input_dim = 32
    out_dim = 10
    batch = 8

    key = jax.random.PRNGKey(0)
    kx, kw, kb, kx2 = jax.random.split(key, 4)

    # Deterministic parameter init (mimic torch.nn.Linear uniform bound 1/sqrt(fan_in))
    bound = 1.0 / jnp.sqrt(jnp.float32(input_dim))
    w = jax.random.uniform(kw, (out_dim, input_dim), jnp.float32, -bound, bound)
    b = jax.random.uniform(kb, (out_dim,), jnp.float32, -bound, bound)
    w_t = w.T  # (input_dim, out_dim)

    forward = make_forward(w_t, b)

    # --- small shape (matches the module's natural toy size) -----------------
    x = jax.random.normal(kx, (batch, input_dim), jnp.float32)
    out = jax.block_until_ready(forward(x))
    ref = reference_forward(x, w_t, b)
    assert out.shape == (batch, out_dim)
    assert jnp.allclose(out, ref, atol=1e-5, rtol=1e-5), "mismatch vs reference (B=8)"
    assert jnp.allclose(jnp.sum(out, axis=1), jnp.ones((batch,)), atol=1e-5)

    # --- larger batch: exercises multi-step grid + ragged last block ---------
    big_batch = 600
    x_big = jax.random.normal(kx2, (big_batch, input_dim), jnp.float32)
    out_big = jax.block_until_ready(forward(x_big))   # tb=304, grid=(2,), ragged
    ref_big = reference_forward(x_big, w_t, b)
    assert out_big.shape == (big_batch, out_dim)
    assert jnp.allclose(out_big, ref_big, atol=1e-5, rtol=1e-5), "mismatch (B=600)"
    assert jnp.allclose(jnp.sum(out_big, axis=1), jnp.ones((big_batch,)), atol=1e-5)

    print("KERNEL_OK")
</pallas_src>

<mosaic_0001>
module attributes {stable_mosaic.version = 11 : i64} {
  func.func @_linear_softmax_kernel(%arg0: i32, %arg1: memref<8x32xf32, #tpu.memory_space<vmem>>, %arg2: memref<32x128xf32, #tpu.memory_space<vmem>>, %arg3: memref<1x128xf32, #tpu.memory_space<vmem>>, %arg4: memref<8x10xf32, #tpu.memory_space<vmem>>) attributes {dimension_semantics = [#tpu.dimension_semantics<parallel>], iteration_bounds = array<i64: 1>, scalar_prefetch = 0 : i64, scratch_operands = 0 : i64, tpu.core_type = #tpu.core_type<tc>, window_params = [{transform_indices = @transform_0, window_bounds = array<i64: 8, 32>}, {pipeline_mode = #tpu.pipeline_mode<synchronous>, transform_indices = @transform_1, window_bounds = array<i64: 32, 128>}, {pipeline_mode = #tpu.pipeline_mode<synchronous>, transform_indices = @transform_2, window_bounds = array<i64: 1, 128>}, {transform_indices = @transform_3, window_bounds = array<i64: 8, 10>}]} {
    %c0 = arith.constant 0 : index
    %c0_0 = arith.constant 0 : index
    %0 = vector.load %arg1[%c0, %c0_0] : memref<8x32xf32, #tpu.memory_space<vmem>>, vector<8x32xf32>
    %c0_1 = arith.constant 0 : index
    %c0_2 = arith.constant 0 : index
    %1 = vector.load %arg2[%c0_1, %c0_2] : memref<32x128xf32, #tpu.memory_space<vmem>>, vector<32x128xf32>
    %cst = arith.constant dense<0.000000e+00> : vector<8x128xf32>
    %2 = tpu.matmul %0, %1, %cst {dimension_numbers = #tpu.dot_dimension_numbers<[1], [0], [0], [1], [0, 0, 1, 1], [], []>} : vector<8x32xf32>, vector<32x128xf32>, vector<8x128xf32> -> vector<8x128xf32>
    %c0_3 = arith.constant 0 : index
    %c0_4 = arith.constant 0 : index
    %3 = vector.load %arg3[%c0_3, %c0_4] : memref<1x128xf32, #tpu.memory_space<vmem>>, vector<1x128xf32>
    %4 = vector.broadcast %3 : vector<1x128xf32> to vector<8x128xf32>
    %5 = arith.addf %2, %4 : vector<8x128xf32>
    %cst_5 = arith.constant dense<0xFF800000> : vector<8xf32>
    %6 = vector.multi_reduction <maximumf>, %5, %cst_5 [1] : vector<8x128xf32> to vector<8xf32>
    %7 = vector.shape_cast %6 : vector<8xf32> to vector<8x1xf32>
    %8 = vector.broadcast %7 : vector<8x1xf32> to vector<8x128xf32>
    %9 = arith.subf %5, %8 : vector<8x128xf32>
    %10 = math.exp %9 : vector<8x128xf32>
    %cst_6 = arith.constant dense<0.000000e+00> : vector<8xf32>
    %11 = vector.multi_reduction <add>, %10, %cst_6 [1] : vector<8x128xf32> to vector<8xf32>
    %12 = vector.shape_cast %11 : vector<8xf32> to vector<8x1xf32>
    %13 = tpu.reciprocal %12 {approx = true} : vector<8x1xf32> -> vector<8x1xf32>
    %14 = arith.mulf %12, %13 : vector<8x1xf32>
    %cst_7 = arith.constant 2.000000e+00 : f32
    %15 = vector.broadcast %cst_7 : f32 to vector<8x1xf32>
    %16 = arith.subf %15, %14 : vector<8x1xf32>
    %17 = arith.mulf %13, %16 : vector<8x1xf32>
    %18 = vector.broadcast %17 : vector<8x1xf32> to vector<8x128xf32>
    %19 = arith.mulf %10, %18 : vector<8x128xf32>
    %20 = vector.extract_strided_slice %19 {offsets = [0, 0], sizes = [8, 10], strides = [1, 1]} : vector<8x128xf32> to vector<8x10xf32>
    %c0_8 = arith.constant 0 : index
    %c0_9 = arith.constant 0 : index
    %21 = vector.load %arg4[%c0_8, %c0_9] : memref<8x10xf32, #tpu.memory_space<vmem>>, vector<8x10xf32>
    tpu.vector_store %arg4[%c0_8, %c0_9], %20 {strides = array<i32>} : memref<8x10xf32, #tpu.memory_space<vmem>>, vector<8x10xf32>,
    return
  }
  func.func @transform_0(%arg0: i32) -> (i32, i32) {
    %c0_i32 = arith.constant 0 : i32
    %c0_i32_0 = arith.constant 0 : i32
    return %arg0, %c0_i32 : i32, i32
  }
  func.func @transform_1(%arg0: i32) -> (i32, i32) {
    %c0_i32 = arith.constant 0 : i32
    %c0_i32_0 = arith.constant 0 : i32
    %c0_i32_1 = arith.constant 0 : i32
    return %c0_i32, %c0_i32_0 : i32, i32
  }
  func.func @transform_2(%arg0: i32) -> (i32, i32) {
    %c0_i32 = arith.constant 0 : i32
    %c0_i32_0 = arith.constant 0 : i32
    %c0_i32_1 = arith.constant 0 : i32
    return %c0_i32, %c0_i32_0 : i32, i32
  }
  func.func @transform_3(%arg0: i32) -> (i32, i32) {
    %c0_i32 = arith.constant 0 : i32
    %c0_i32_0 = arith.constant 0 : i32
    return %arg0, %c0_i32 : i32, i32
  }
}

</mosaic_0001>

<bundles_post_ra>
// kernel: fwd.1
= control target key start
LH: loop header
LB: loop body
LE: loop exit
PB: predicated region body
PF: predicated region fallthrough
CT: control target
= control target key end

     0   :  { %8 = vsyncpa [#allocation3], 0  ;;  %s236_s0 = inlined_call_operand.hbm [shape: f32[8,32], index: 0, kind: input, shape index: {}]   ;;  %s237_s1 = inlined_call_operand.hbm [shape: f32[32,128], index: 1, kind: input, shape index: {}]   ;;  %s238_s2 = inlined_call_operand.vmem [shape: f32[1,128], index: 2, kind: input, shape index: {}]   ;;  %s239_s3 = inlined_call_operand.hbm [shape: f32[8,10], index: 3, kind: output, shape index: {}]  }
   0x1   :  { %9 = vsyncpa [#allocation6], 0 }
   0x2   :  { %10 = vsyncpa [#allocation4], 0  ;;  %s16_s14 = sshll.u32 %s236_s0, 4  ;;  %s199_s15 = smov [#allocation2]   ;;  %s17_s14 = int_to_ptr.hbm [resolvable:$true] %s16_s14 }
   0x3   :  { %s18_s16 = sshll.u32 %s199_s15, 4  ;;  %s26_s19 = sshll.u32 %s237_s1, 4  ;;  %s19_s16 = int_to_ptr.vmem [resolvable:$true] %s18_s16  ;;  %s27_s19 = int_to_ptr.hbm [resolvable:$true] %s26_s19 }
   0x4   :  { %21 = dma.hbm_to_vmem [thread:$0]  %s17_s14, 128, %s19_s16, [#allocation3]  }
   0x5   :  { %s200_s20 = smov [#allocation5]   ;;  %s201_s22 = smov 128  }
   0x6   :  { %s28_s21 = sshll.u32 %s200_s20, 4  ;;  %s202_s23 = smov 8   ;;  %s29_s21 = int_to_ptr.vmem [resolvable:$true] %s28_s21 }
   0x7   :  { %34 = dma.hbm_to_vmem [thread:$0]  %s27_s19, 512, %s29_s21, [#allocation6], %s201_s22, %s201_s22, %s202_s23  }
   0x8   :  { %193 = dma.done.wait [#allocation3], 128  }
   0x9   :  { %194 = vsyncadd [#allocation3], 4294967168 }
   0xa   :  { %195 = dma.done.wait [#allocation6], 512  }
   0xb   :  { %196 = vsyncadd [#allocation6], 4294966784  ;;  %v49_v0 = vld [vmem:[#allocation5 + $0x18] sm:$0xff]  ;;  %v48_v1 = vld [vmem:[#allocation5 + $0x10] sm:$0xff]  ;;  %vm54_vm0 = vcmask 261120   ;;  %s203_s24 = smov [#allocation7]  }
   0xc   :  { %70 = vmatpush.msra.mxu0 %v49_v0  ;;  %v47_v2 = vld [vmem:[#allocation5 + $0x8] sm:$0xff]  ;;  %v46_v3 = vld [vmem:[#allocation5] sm:$0xff]  ;;  %v45_v4 = vld [vmem:[#allocation2] sm:$0xff]  ;;  %s97_s25 = sshll.u32 %s203_s24, 4  ;;  %vm90_vm1 = vcmask 80896   ;;  %s98_s25 = int_to_ptr.vmem [resolvable:$true] %s97_s25 }
   0xd   :  { %v116_v5 = vld [vmem:[%s238_s2] ss:$0 sm:$0xff]  ;;  %s99_s2 = sshll.u32 %s239_s3, 4  ;;  %s100_s2 = int_to_ptr.hbm [resolvable:$true] %s99_s2 }
   0xe   :  { %71 = vmatpush.msra.mxu0 %v48_v1 }
  0x10   :  { %72 = vmatpush.msra.mxu0 %v47_v2 }
  0x12   :  { %73 = vmatpush.msra.mxu0 %v46_v3 }
  0x13   :  { %110 = vmatmul.msk.f32.vlgmr.msra.gmra.mxu0 %vm54_vm0, %v45_v4 }
  0x90   :  { %v75_v6 = vpop.f32.mrf.mxu0 }
  0x91   :  { %v76_v7 = vadd.f32 %v116_v5, %v75_v6 }
  0x93   :  { %78 = vmax.xlane.f32.xlu0 %v76_v7 }
 0x106   :  { %v79_v8 = vpop.xlane.xlu0 %78 }
 0x107   :  { %v80_v9 = vsub.f32 %v76_v7, %v79_v8 }
 0x109   :  { %v81_v10 = vmul.f32 1.442695, %v80_v9 }
 0x10b   :  { %117 = vpow2.f32 %v81_v10 }
 0x111   :  { %v118_v11 = vpop.eup %117 }
 0x112   :  { %83 = vadd.xlane.f32.xlu0 %v118_v11 }
 0x185   :  { %v84_v12 = vpop.xlane.xlu0 %83 }
 0x186   :  { %119 = vrcp.f32 %v84_v12 }
 0x18c   :  { %v120_v13 = vpop.eup %119 }
 0x18d   :  { %v86_v14 = vmul.f32 %v120_v13, %v84_v12 }
 0x18f   :  { %v87_v15 = vsub.f32 2.0, %v86_v14 }
 0x191   :  { %v88_v16 = vmul.f32 %v120_v13, %v87_v15 }
 0x193   :  { %v89_v17 = vmul.f32 %v118_v11, %v88_v16 }
 0x195   :  { %91 = vst.msk [vmem:[#allocation7] sm:$0xff] %vm90_vm1, %v89_v17 }
 0x196   :  { %102 = dma.vmem_to_hbm [thread:$0]  %s98_s25, 128, %s100_s2, [#allocation4]  }
 0x197   :  { %197 = dma.done.wait [#allocation4], 128  }
 0x198   :  { %198 = vsyncadd [#allocation4], 4294967168 }
 0x199   :  { %107 = vsyncpa [#allocation3], 1 }
 0x19a   :  { %108 = vsyncpa [#allocation6], 1 }
 0x19b   :  { %109 = vsyncpa [#allocation4], 1 }

</bundles_post_ra>
